<compile_context>
chip_gen: v5e
topology: v5e:2x2
jax: 0.10.0
libtpu: 0.0.40
codegen_flags: <defaults>
</compile_context>

<pallas_src>
import functools

import jax
import jax.numpy as jnp
from jax.experimental import pallas as pl
from jax.experimental.pallas import tpu as pltpu


def _ffn_kernel_single(x_ref, w1_ref, b1_ref, w2_ref, b2_ref, o_ref):
    # Whole hidden dimension in one shot: no scratch, direct store.
    # x_ref: (tm, d_model)  w1_ref: (d_model, hidden)  b1_ref: (1, hidden)
    # w2_ref: (hidden, d_model)  b2_ref: (1, d_model)  o_ref: (tm, d_model)
    h = jnp.dot(x_ref[...], w1_ref[...], preferred_element_type=jnp.float32)
    h = jnp.maximum(h + b1_ref[...], 0.0)
    out = jnp.dot(
        h.astype(w2_ref.dtype), w2_ref[...], preferred_element_type=jnp.float32
    )
    o_ref[...] = (out + b2_ref[...]).astype(o_ref.dtype)


def _ffn_kernel_tiled(x_ref, w1_ref, b1_ref, w2_ref, b2_ref, o_ref, acc_ref):
    # x_ref:  (tm, d_model)
    # w1_ref: (d_model, tk)   b1_ref: (1, tk)
    # w2_ref: (tk, d_model)   b2_ref: (1, d_model)
    # o_ref:  (tm, d_model)   acc_ref: (tm, d_model) f32 scratch
    k = pl.program_id(1)

    @pl.when(k == 0)
    def _init():
        acc_ref[...] = jnp.zeros_like(acc_ref)

    # First linear (slice of hidden) + bias + ReLU, all in f32.
    h = jnp.dot(x_ref[...], w1_ref[...], preferred_element_type=jnp.float32)
    h = jnp.maximum(h + b1_ref[...], 0.0)

    # Accumulate the second linear over hidden tiles.
    acc_ref[...] += jnp.dot(
        h.astype(w2_ref.dtype), w2_ref[...], preferred_element_type=jnp.float32
    )

    @pl.when(k == pl.num_programs(1) - 1)
    def _finalize():
        o_ref[...] = (acc_ref[...] + b2_ref[...]).astype(o_ref.dtype)


def _round_up(x, m):
    return ((x + m - 1) // m) * m


def _choose_tm(n, tm):
    """Row tile: large (MXU-aligned) if there are enough rows, else all rows."""
    if n <= tm:
        return _round_up(n, 8)
    return _round_up(tm, 8)


def _choose_tk(hidden, tk):
    """Hidden tile: multiple of 128 that divides hidden, else the full dim."""
    if hidden % 128 != 0 or hidden <= tk:
        return hidden
    tk = max(128, (min(tk, hidden) // 128) * 128)
    while hidden % tk != 0:
        tk -= 128
    return tk


@functools.partial(jax.jit, static_argnames=("tm", "tk", "vmem_limit_bytes"))
def feed_forward(x, w1, b1, w2, b2, *, tm=256, tk=512, vmem_limit_bytes=None):
    """x: (..., d_model) -> (..., d_model); fused MLP in one Pallas kernel.

    tm: row tile (256 matches the v6e/v7x 256x256 MXU; use 128 on v5e).
    tk: hidden-dimension tile (weights stream through VMEM in (d_model, tk)
        and (tk, d_model) slabs, f32-accumulated across k-steps).
    """
    orig_shape = x.shape
    d_model = orig_shape[-1]
    hidden = w1.shape[1]

    x2d = x.reshape(-1, d_model)
    n = x2d.shape[0]

    tm_eff = _choose_tm(n, tm)
    tk_eff = _choose_tk(hidden, tk)

    # Pad rows to a multiple of the row tile (padded rows are sliced off).
    n_pad = _round_up(n, tm_eff)
    if n_pad != n:
        x2d = jnp.pad(x2d, ((0, n_pad - n), (0, 0)))

    b1r = b1.reshape(1, hidden)
    b2r = b2.reshape(1, d_model)

    num_k = hidden // tk_eff

    # Explicit VMEM budget: 2x (double-buffered) input/output tiles + f32 acc,
    # with headroom; floor at 32 MiB (raises v5e's 16 MiB default), cap so the
    # request stays within v7x's 64 MiB physical VMEM.
    if vmem_limit_bytes is None:
        dsz = jnp.dtype(x.dtype).itemsize
        est = (
            2
            * (
                tm_eff * d_model          # x tile
                + d_model * tk_eff        # W1 tile
                + tk_eff                  # b1 tile
                + tk_eff * d_model        # W2 tile
                + d_model                 # b2 tile
                + tm_eff * d_model        # out tile
            )
            * dsz
            + tm_eff * d_model * 4        # f32 accumulator scratch
        )
        vmem_limit = max(32 << 20, min(int(1.5 * est) + (4 << 20), 60 << 20))
    else:
        vmem_limit = vmem_limit_bytes

    if num_k == 1:
        # Single-step path: no scratch accumulator, 1-D fully-parallel grid.
        out = pl.pallas_call(
            _ffn_kernel_single,
            out_shape=jax.ShapeDtypeStruct((n_pad, d_model), x.dtype),
            grid_spec=pltpu.PrefetchScalarGridSpec(
                num_scalar_prefetch=0,
                grid=(n_pad // tm_eff,),
                in_specs=[
                    pl.BlockSpec((tm_eff, d_model), lambda i: (i, 0)),   # x tile
                    pl.BlockSpec((d_model, hidden), lambda i: (0, 0)),   # W1
                    pl.BlockSpec((1, hidden), lambda i: (0, 0)),         # b1
                    pl.BlockSpec((hidden, d_model), lambda i: (0, 0)),   # W2
                    pl.BlockSpec((1, d_model), lambda i: (0, 0)),        # b2
                ],
                out_specs=pl.BlockSpec((tm_eff, d_model), lambda i: (i, 0)),
            ),
            compiler_params=pltpu.CompilerParams(
                dimension_semantics=("parallel",),
                vmem_limit_bytes=vmem_limit,
            ),
        )(x2d, w1, b1r, w2, b2r)
    else:
        out = pl.pallas_call(
            _ffn_kernel_tiled,
            out_shape=jax.ShapeDtypeStruct((n_pad, d_model), x.dtype),
            grid_spec=pltpu.PrefetchScalarGridSpec(
                num_scalar_prefetch=0,
                grid=(n_pad // tm_eff, num_k),
                in_specs=[
                    pl.BlockSpec((tm_eff, d_model), lambda i, k: (i, 0)),   # x tile
                    pl.BlockSpec((d_model, tk_eff), lambda i, k: (0, k)),   # W1 slab
                    pl.BlockSpec((1, tk_eff), lambda i, k: (0, k)),         # b1 slab
                    pl.BlockSpec((tk_eff, d_model), lambda i, k: (k, 0)),   # W2 slab
                    pl.BlockSpec((1, d_model), lambda i, k: (0, 0)),        # b2
                ],
                out_specs=pl.BlockSpec((tm_eff, d_model), lambda i, k: (i, 0)),
                scratch_shapes=[pltpu.VMEM((tm_eff, d_model), jnp.float32)],
            ),
            compiler_params=pltpu.CompilerParams(
                dimension_semantics=("parallel", "arbitrary"),
                vmem_limit_bytes=vmem_limit,
            ),
        )(x2d, w1, b1r, w2, b2r)

    if n_pad != n:
        out = out[:n]
    return out.reshape(orig_shape)


def init_params(key, d_model, hidden, dtype=jnp.float32):
    """PyTorch-Linear-style init (uniform +/- 1/sqrt(fan_in)); weights are
    returned already transposed to (in_features, out_features)."""
    k1, k2, k3, k4 = jax.random.split(key, 4)
    bound1 = 1.0 / jnp.sqrt(d_model)
    bound2 = 1.0 / jnp.sqrt(hidden)
    w1 = jax.random.uniform(k1, (d_model, hidden), dtype, -bound1, bound1)
    b1 = jax.random.uniform(k2, (hidden,), dtype, -bound1, bound1)
    w2 = jax.random.uniform(k3, (hidden, d_model), dtype, -bound2, bound2)
    b2 = jax.random.uniform(k4, (d_model,), dtype, -bound2, bound2)
    return w1, b1, w2, b2


if __name__ == "__main__":
    # --- Small shapes consistent with the module (single tile, single k-step)
    key = jax.random.PRNGKey(0)
    batch, seq, d_model, hidden = 2, 8, 32, 64
    kx, kp = jax.random.split(key)
    x = jax.random.normal(kx, (batch, seq, d_model), jnp.float32)
    w1, b1, w2, b2 = init_params(kp, d_model, hidden)

    y = feed_forward(x, w1, b1, w2, b2)
    jax.block_until_ready(y)

    ref = jnp.maximum(x @ w1 + b1, 0.0) @ w2 + b2
    assert y.shape == x.shape
    assert jnp.allclose(y, ref, atol=1e-4, rtol=1e-4), "mismatch vs reference (small)"

    # --- Lane-dense tiled path: exercises row padding (400 -> 512), the
    # multi-step hidden reduction (tk=256 -> 2 k-steps), and the parallel axis.
    batch2, seq2, d_model2, hidden2 = 2, 200, 128, 512
    kx2, kp2 = jax.random.split(jax.random.PRNGKey(1))
    x2 = jax.random.normal(kx2, (batch2, seq2, d_model2), jnp.float32)
    w1b, b1b, w2b, b2b = init_params(kp2, d_model2, hidden2)

    y2 = feed_forward(x2, w1b, b1b, w2b, b2b, tm=256, tk=256)
    jax.block_until_ready(y2)

    ref2 = jnp.maximum(x2 @ w1b + b1b, 0.0) @ w2b + b2b
    assert y2.shape == x2.shape
    assert jnp.allclose(y2, ref2, atol=2e-3, rtol=2e-3), "mismatch vs reference (tiled)"

    print("KERNEL_OK")
</pallas_src>

<mosaic_0001>
module attributes {stable_mosaic.version = 11 : i64} {
  func.func @_ffn_kernel_single(%arg0: i32, %arg1: memref<16x32xf32, #tpu.memory_space<vmem>>, %arg2: memref<32x64xf32, #tpu.memory_space<vmem>>, %arg3: memref<1x64xf32, #tpu.memory_space<vmem>>, %arg4: memref<64x32xf32, #tpu.memory_space<vmem>>, %arg5: memref<1x32xf32, #tpu.memory_space<vmem>>, %arg6: memref<16x32xf32, #tpu.memory_space<vmem>>) attributes {dimension_semantics = [#tpu.dimension_semantics<parallel>], iteration_bounds = array<i64: 1>, scalar_prefetch = 0 : i64, scratch_operands = 0 : i64, tpu.core_type = #tpu.core_type<tc>, window_params = [{transform_indices = @transform_0, window_bounds = array<i64: 16, 32>}, {pipeline_mode = #tpu.pipeline_mode<synchronous>, transform_indices = @transform_1, window_bounds = array<i64: 32, 64>}, {pipeline_mode = #tpu.pipeline_mode<synchronous>, transform_indices = @transform_2, window_bounds = array<i64: 1, 64>}, {pipeline_mode = #tpu.pipeline_mode<synchronous>, transform_indices = @transform_3, window_bounds = array<i64: 64, 32>}, {pipeline_mode = #tpu.pipeline_mode<synchronous>, transform_indices = @transform_4, window_bounds = array<i64: 1, 32>}, {transform_indices = @transform_5, window_bounds = array<i64: 16, 32>}]} {
    %c0 = arith.constant 0 : index
    %c0_0 = arith.constant 0 : index
    %0 = vector.load %arg1[%c0, %c0_0] : memref<16x32xf32, #tpu.memory_space<vmem>>, vector<16x32xf32>
    %c0_1 = arith.constant 0 : index
    %c0_2 = arith.constant 0 : index
    %1 = vector.load %arg2[%c0_1, %c0_2] : memref<32x64xf32, #tpu.memory_space<vmem>>, vector<32x64xf32>
    %cst = arith.constant dense<0.000000e+00> : vector<16x64xf32>
    %2 = tpu.matmul %0, %1, %cst {dimension_numbers = #tpu.dot_dimension_numbers<[1], [0], [0], [1], [0, 0, 1, 1], [], []>} : vector<16x32xf32>, vector<32x64xf32>, vector<16x64xf32> -> vector<16x64xf32>
    %c0_3 = arith.constant 0 : index
    %c0_4 = arith.constant 0 : index
    %3 = vector.load %arg3[%c0_3, %c0_4] : memref<1x64xf32, #tpu.memory_space<vmem>>, vector<1x64xf32>
    %4 = vector.broadcast %3 : vector<1x64xf32> to vector<16x64xf32>
    %5 = arith.addf %2, %4 : vector<16x64xf32>
    %cst_5 = arith.constant 0.000000e+00 : f32
    %6 = vector.broadcast %cst_5 : f32 to vector<16x64xf32>
    %7 = arith.maximumf %5, %6 : vector<16x64xf32>
    %c0_6 = arith.constant 0 : index
    %c0_7 = arith.constant 0 : index
    %8 = vector.load %arg4[%c0_6, %c0_7] : memref<64x32xf32, #tpu.memory_space<vmem>>, vector<64x32xf32>
    %cst_8 = arith.constant dense<0.000000e+00> : vector<16x32xf32>
    %9 = tpu.matmul %7, %8, %cst_8 {dimension_numbers = #tpu.dot_dimension_numbers<[1], [0], [0], [1], [0, 0, 1, 1], [], []>} : vector<16x64xf32>, vector<64x32xf32>, vector<16x32xf32> -> vector<16x32xf32>
    %c0_9 = arith.constant 0 : index
    %c0_10 = arith.constant 0 : index
    %10 = vector.load %arg5[%c0_9, %c0_10] : memref<1x32xf32, #tpu.memory_space<vmem>>, vector<1x32xf32>
    %11 = vector.broadcast %10 : vector<1x32xf32> to vector<16x32xf32>
    %12 = arith.addf %9, %11 : vector<16x32xf32>
    %c0_11 = arith.constant 0 : index
    %c0_12 = arith.constant 0 : index
    %13 = vector.load %arg6[%c0_11, %c0_12] : memref<16x32xf32, #tpu.memory_space<vmem>>, vector<16x32xf32>
    tpu.vector_store %arg6[%c0_11, %c0_12], %12 {strides = array<i32>} : memref<16x32xf32, #tpu.memory_space<vmem>>, vector<16x32xf32>,
    return
  }
  func.func @transform_0(%arg0: i32) -> (i32, i32) {
    %c0_i32 = arith.constant 0 : i32
    %c0_i32_0 = arith.constant 0 : i32
    return %arg0, %c0_i32 : i32, i32
  }
  func.func @transform_1(%arg0: i32) -> (i32, i32) {
    %c0_i32 = arith.constant 0 : i32
    %c0_i32_0 = arith.constant 0 : i32
    %c0_i32_1 = arith.constant 0 : i32
    return %c0_i32, %c0_i32_0 : i32, i32
  }
  func.func @transform_2(%arg0: i32) -> (i32, i32) {
    %c0_i32 = arith.constant 0 : i32
    %c0_i32_0 = arith.constant 0 : i32
    %c0_i32_1 = arith.constant 0 : i32
    return %c0_i32, %c0_i32_0 : i32, i32
  }
  func.func @transform_3(%arg0: i32) -> (i32, i32) {
    %c0_i32 = arith.constant 0 : i32
    %c0_i32_0 = arith.constant 0 : i32
    %c0_i32_1 = arith.constant 0 : i32
    return %c0_i32, %c0_i32_0 : i32, i32
  }
  func.func @transform_4(%arg0: i32) -> (i32, i32) {
    %c0_i32 = arith.constant 0 : i32
    %c0_i32_0 = arith.constant 0 : i32
    %c0_i32_1 = arith.constant 0 : i32
    return %c0_i32, %c0_i32_0 : i32, i32
  }
  func.func @transform_5(%arg0: i32) -> (i32, i32) {
    %c0_i32 = arith.constant 0 : i32
    %c0_i32_0 = arith.constant 0 : i32
    return %arg0, %c0_i32 : i32, i32
  }
}

</mosaic_0001>

<bundles_post_ra>
// kernel: feed_forward.1
= control target key start
LH: loop header
LB: loop body
LE: loop exit
PB: predicated region body
PF: predicated region fallthrough
CT: control target
= control target key end

     0   :  { %s260_s0 = inlined_call_operand.vmem [shape: f32[16,32], index: 0, kind: input, shape index: {}]   ;;  %s261_s1 = inlined_call_operand.vmem [shape: f32[32,64], index: 1, kind: input, shape index: {}]   ;;  %s262_s2 = inlined_call_operand.vmem [shape: f32[1,64], index: 2, kind: input, shape index: {}]   ;;  %s263_s3 = inlined_call_operand.vmem [shape: f32[64,32], index: 3, kind: input, shape index: {}]   ;;  %s264_s4 = inlined_call_operand.vmem [shape: f32[1,32], index: 4, kind: input, shape index: {}]   ;;  %s265_s5 = inlined_call_operand.hbm [shape: f32[16,32], index: 5, kind: output, shape index: {}]  }
   0x1   :  { %v26_v0 = vld [vmem:[%s261_s1 + $0x18] sm:$0xff]  ;;  %v25_v1 = vld [vmem:[%s261_s1 + $0x10] sm:$0xff]  ;;  %v24_v2 = vld [vmem:[%s261_s1 + $0x8] sm:$0xff] }
   0x2   :  { %129 = vmatpush.msra.mxu3 %v26_v0  ;;  %50 = vmatpush.msra.mxu0 %v26_v0  ;;  %v70_v3 = vld [vmem:[%s263_s3 + $0x38] sm:$0xff]  ;;  %v69_v4 = vld [vmem:[%s263_s3 + $0x30] sm:$0xff]  ;;  %v23_v5 = vld [vmem:[%s261_s1] sm:$0xff] }
   0x3   :  { %133 = vmatpush.msra.mxu2 %v70_v3  ;;  %90 = vmatpush.msra.mxu1 %v70_v3 }
   0x4   :  { %130 = vmatpush.msra.mxu3 %v25_v1  ;;  %51 = vmatpush.msra.mxu0 %v25_v1 }
   0x5   :  { %10 = vsyncpa [#allocation3], 0  ;;  %v22_v6 = vld [vmem:[%s260_s0 + $0x8] sm:$0xff]  ;;  %vm31_vm0 = vcmask 261120   ;;  %v21_v7 = vld [vmem:[%s260_s0] sm:$0xff]  ;;  %134 = vmatpush.msra.mxu2 %v69_v4  ;;  %91 = vmatpush.msra.mxu1 %v69_v4  ;;  %vm75_vm1 = vcmask 523264  }
   0x6   :  { %131 = vmatpush.msra.mxu3 %v24_v2  ;;  %52 = vmatpush.msra.mxu0 %v24_v2  ;;  %v68_v8 = vld [vmem:[%s263_s3 + $0x28] sm:$0xff]  ;;  %v67_v9 = vld [vmem:[%s263_s3 + $0x20] sm:$0xff]  ;;  %v66_v10 = vld [vmem:[%s263_s3 + $0x18] sm:$0xff]  ;;  %s113_s25 = sshll.u32 %s265_s5, 4  ;;  %s173_s26 = smov 128   ;;  %s114_s25 = int_to_ptr.hbm [resolvable:$true] %s113_s25 }
   0x7   :  { %135 = vmatpush.msra.mxu2 %v68_v8  ;;  %92 = vmatpush.msra.mxu1 %v68_v8  ;;  %v65_v11 = vld [vmem:[%s263_s3 + $0x10] sm:$0xff]  ;;  %v64_v12 = vld [vmem:[%s263_s3 + $0x8] sm:$0xff]  ;;  %v63_v13 = vld [vmem:[%s263_s3] sm:$0xff]  ;;  %s172_s3 = smov [#allocation2]   ;;  %s174_s27 = smov 8  }
   0x8   :  { %132 = vmatpush.msra.mxu3 %v23_v5  ;;  %53 = vmatpush.msra.mxu0 %v23_v5  ;;  %v144_v14 = vld [vmem:[%s262_s2] ss:$0 sm:$0xff]  ;;  %s111_s23 = sshll.u32 %s172_s3, 4  ;;  %s112_s23 = int_to_ptr.vmem [resolvable:$true] %s111_s23 }
   0x9   :  { %126 = vmatmul.msk.f32.vlgmr.msra.gmra.mxu3 %vm31_vm0, %v22_v6  ;;  %125 = vmatmul.msk.f32.vlgmr.msra.gmra.mxu0 %vm31_vm0, %v21_v7  ;;  %v145_v21 = vld [vmem:[%s264_s4] ss:$0 sm:$0xff] }
   0xa   :  { %136 = vmatpush.msra.mxu2 %v67_v9  ;;  %93 = vmatpush.msra.mxu1 %v67_v9 }
   0xc   :  { %137 = vmatpush.msra.mxu2 %v66_v10  ;;  %94 = vmatpush.msra.mxu1 %v66_v10 }
   0xe   :  { %138 = vmatpush.msra.mxu2 %v65_v11  ;;  %95 = vmatpush.msra.mxu1 %v65_v11 }
  0x10   :  { %139 = vmatpush.msra.mxu2 %v64_v12  ;;  %96 = vmatpush.msra.mxu1 %v64_v12 }
  0x12   :  { %140 = vmatpush.msra.mxu2 %v63_v13  ;;  %97 = vmatpush.msra.mxu1 %v63_v13 }
  0x86   :  { %v55_v15 = vpop.f32.mrf.mxu0 }
  0x87   :  { %v56_v16 = vadd.f32 %v144_v14, %v55_v15 }
  0x89   :  { %v61_v17 = vmax.f32 %v56_v16, 0.0 }
  0x8b   :  { %127 = vmatmul.msk.f32.vlgmr.msra.gmra.mxu1 %vm75_vm1, %v61_v17 }
  0x8c   :  { %v58_v18 = vpop.f32.mrf.mxu3 }
  0x8d   :  { %v59_v19 = vadd.f32 %v144_v14, %v58_v18 }
  0x8f   :  { %v62_v20 = vmax.f32 %v59_v19, 0.0 }
  0x91   :  { %128 = vmatmul.msk.f32.vlgmr.msra.gmra.mxu2 %vm75_vm1, %v62_v20 }
 0x108   :  { %v99_v22 = vpop.f32.mrf.mxu1 }
 0x109   :  { %v100_v23 = vadd.f32 %v145_v21, %v99_v22 }
 0x10b   :  { %105 = vst.msk [vmem:[#allocation2] sm:$0xff] %vm31_vm0, %v100_v23 }
 0x114   :  { %v102_v24 = vpop.f32.mrf.mxu2 }
 0x115   :  { %v103_v25 = vadd.f32 %v145_v21, %v102_v24 }
 0x117   :  { %106 = vst.msk [vmem:[#allocation2 + $0x8] sm:$0xff] %vm31_vm0, %v103_v25 }
 0x118   :  { %119 = dma.vmem_to_hbm [thread:$0]  %s112_s23, 256, %s114_s25, [#allocation3], %s173_s26, %s173_s26, %s174_s27  }
 0x119   :  { %170 = dma.done.wait [#allocation3], 256  }
 0x11a   :  { %171 = vsyncadd [#allocation3], 4294967040 }
 0x11b   :  { %124 = vsyncpa [#allocation3], 1 }

</bundles_post_ra>
